<compile_context>
chip_gen: v5e
topology: v5e:2x2
jax: 0.10.0
libtpu: 0.0.40
codegen_flags: <defaults>
</compile_context>

<pallas_src>
import math

import jax
import jax.numpy as jnp
from jax.experimental import pallas as pl
from jax.experimental.pallas import tpu as pltpu

_EPS = 1e-5


# --------------------------- in-kernel helpers ------------------------------
def _conv3x3_banded(u, w_ref, m_ref):
    """3x3 'same' conv on a (H, W*Ci) lane-dense slab via 3 banded MXU matmuls.

    u:     (H, W*Ci) f32 conv input (BatchNorm scale already folded into w).
    w_ref: (3, W*Ci, Nd) bf16 per-kh banded weights; the 3 horizontal taps and
           the horizontal zero padding (and optionally the horizontal half of
           AvgPool2d(2)) are folded into the band structure.
    m_ref: (2, H, W*Ci) f32 row masks zeroing the vertical zero-padding taps
           (m[0] zeros output row 0 for kh=0, m[1] zeros row H-1 for kh=2).
    """
    H = u.shape[0]
    # kh = 1 (same row): no roll, no mask.
    acc = jnp.dot(u.astype(jnp.bfloat16), w_ref[1],
                  preferred_element_type=jnp.float32)
    # kh = 0 (row above): sublane roll down by 1, zero the wrapped top row.
    t0 = pltpu.roll(u, shift=1, axis=0) * m_ref[0]
    acc += jnp.dot(t0.astype(jnp.bfloat16), w_ref[0],
                   preferred_element_type=jnp.float32)
    # kh = 2 (row below): sublane roll up by 1, zero the wrapped bottom row.
    t2 = pltpu.roll(u, shift=H - 1, axis=0) * m_ref[1]
    acc += jnp.dot(t2.astype(jnp.bfloat16), w_ref[2],
                   preferred_element_type=jnp.float32)
    return acc


def _pass_a_kernel(x_ref, w1_ref, m_ref, s1_ref, c1_ref, t1_ref, sums_ref):
    """t1 = conv1(bn1(relu(x)))  +  per-image bn2 partial sums of relu(t1)."""
    u = jnp.maximum(x_ref[0], 0.0) + s1_ref[...]           # relu -> bn1 shift
    t1 = _conv3x3_banded(u, w1_ref, m_ref) + c1_ref[...]   # conv1 (+ bias)
    t1_ref[0] = t1.astype(jnp.bfloat16)                    # bf16 inter-pass tensor
    r = jnp.maximum(t1, 0.0)                               # bn2 input
    sums_ref[0] = jnp.concatenate(
        [jnp.sum(r, axis=0, keepdims=True),
         jnp.sum(r * r, axis=0, keepdims=True)], axis=0)   # (2, W*Co) partial stats


def _res_kernel(x_ref, t1_ref, w2_ref, m_ref, s2_ref, c2_ref, out_ref):
    """stride == 1: conv2(bn2(relu(t1))) + x."""
    u = jnp.maximum(t1_ref[0].astype(jnp.float32), 0.0) + s2_ref[...]
    t2 = _conv3x3_banded(u, w2_ref, m_ref) + c2_ref[...]
    out_ref[0] = t2 + x_ref[0]                              # identity residual


def _pool_res_kernel(x_ref, t1_ref, w2p_ref, m_ref, s2_ref,
                     wbp_ref, pv_ref, cb_ref, out_ref):
    """stride == 2: avgpool(conv2(bn2(relu(t1)))) + avgpool(1x1(bn3(x))).

    Horizontal pooling is folded into w2p / wbp; pooling of both branches'
    constant terms is the constant itself (added after pooling as cb).
    """
    u = jnp.maximum(t1_ref[0].astype(jnp.float32), 0.0) + s2_ref[...]
    z = _conv3x3_banded(u, w2p_ref, m_ref)                  # conv2 (+ h-pool), (H, Wo*Co)
    z += jnp.dot(x_ref[0].astype(jnp.bfloat16), wbp_ref[...],
                 preferred_element_type=jnp.float32)        # bypass 1x1 (+ h-pool)
    pooled = jnp.dot(pv_ref[...], z.astype(jnp.bfloat16),
                     preferred_element_type=jnp.float32)    # vertical row-pair avg
    out_ref[0] = pooled + cb_ref[...]


# --------------------------- host-side helpers ------------------------------
def _banded_conv_weights(wt, a_in, W, pool_w=False):
    """Per-kh banded matmul weights for a 3x3 'same' conv in (H, W*Ci) layout.

    wt:    (Co, Ci, 3, 3) torch conv weight (cross-correlation convention).
    a_in:  (Ci,) per-input-channel scale folded into the weight (bn gamma/std).
    Returns (3, W*Ci, W*Co) bf16; if pool_w, the horizontal half of AvgPool2d(2)
    is folded in and the output width is (W//2)*Co.
    """
    Co, Ci = wt.shape[0], wt.shape[1]
    wts = wt * a_in[None, :, None, None]
    w = jnp.arange(W)
    kw = w[:, None] - w[None, :] + 1               # source col - dest col + 1
    valid = (kw >= 0) & (kw <= 2)                  # horizontal zero padding
    kw_c = jnp.clip(kw, 0, 2)
    bands = []
    for kh in range(3):
        g = wts[:, :, kh, :][:, :, kw_c]           # (Co, Ci, W, Wd)
        g = jnp.where(valid[None, None], g, 0.0)
        g = jnp.transpose(g, (2, 1, 3, 0)).reshape(W * Ci, W * Co)
        bands.append(g)
    b = jnp.stack(bands, 0)                        # (3, W*Ci, W*Co)
    if pool_w:
        Wo = W // 2
        b = 0.5 * b.reshape(3, W * Ci, Wo, 2, Co).sum(axis=3)
        b = b.reshape(3, W * Ci, Wo * Co)
    return b.astype(jnp.bfloat16)


def _bypass_pooled_weight(wb, a3, W):
    """(W*Ci, Wo*Co) weight = bn3 scale + 1x1 conv + horizontal half of the pool."""
    Co, Ci = wb.shape[0], wb.shape[1]
    base = a3[:, None] * wb[:, :, 0, 0].T          # (Ci, Co)
    Wo = W // 2
    sel = ((jnp.arange(W)[:, None] // 2) == jnp.arange(Wo)[None, :]).astype(jnp.float32)
    m = 0.5 * sel[:, None, :, None] * base[None, :, None, :]   # (W, Ci, Wo, Co)
    return m.reshape(W * Ci, Wo * Co).astype(jnp.bfloat16)


def _vpool_matrix(H):
    """(Ho, H) row-pair averaging matrix (vertical half of AvgPool2d(2))."""
    Ho = H // 2
    return (0.5 * ((jnp.arange(H)[None, :] // 2)
                   == jnp.arange(Ho)[:, None])).astype(jnp.bfloat16)


def _row_masks(H, WC):
    """(2, H, WC) masks for the vertical zero-padding taps (hoisted out of kernel)."""
    rows = jnp.arange(H)[:, None]
    m0 = jnp.broadcast_to((rows != 0).astype(jnp.float32), (H, WC))      # kh = 0
    m1 = jnp.broadcast_to((rows != H - 1).astype(jnp.float32), (H, WC))  # kh = 2
    return jnp.stack([m0, m1], axis=0)


def _vmem_limit(blocks):
    """Scoped-VMEM budget derived from the per-step block bytes (feedback)."""
    per_step = sum(math.prod(s) * jnp.dtype(d).itemsize for s, d in blocks)
    need = 2 * per_step + (4 << 20)        # double-buffered blocks + compiler headroom
    return int(min(max(need, 8 << 20), 48 << 20))   # cap for v7x's 64 MiB physical


def _safe_div(num, den):
    # gamma == 0 (degenerate BatchNorm) is not supported by the folded path.
    return num / jnp.where(den == 0, 1.0, den)


# ------------------------------ host wrapper --------------------------------
def res_block_dis_forward(x_nchw, params, stride=1):
    N, Cin, H, W = x_nchw.shape
    Cout = params["w1"].shape[0]
    # As written in the PyTorch module, both branches need in_ch == out_ch.
    assert Cin == Cout, "ResBlockDis forward requires in_channels == out_channels"
    if stride != 1:
        assert stride == 2 and H % 2 == 0 and W % 2 == 0
    Ho, Wo = H // stride, W // stride
    WCi, WCo = W * Cin, W * Cout
    cnt = float(N * H * W)

    # NCHW -> lane-dense per-image slabs (N, H, W*C); channels fastest on lanes.
    # (If the surrounding model carried NHWC these transposes would be dropped.)
    x = jnp.transpose(x_nchw, (0, 2, 3, 1)).astype(jnp.float32).reshape(N, H, WCi)
    xs = x.reshape(N, H, W, Cin)

    # ---- bn1 affine from ONE fused pass over x (E[x^2] - mean^2) ----
    xr = jnp.maximum(xs, 0.0)                      # fused into the reductions by XLA
    mean1 = jnp.sum(xr, axis=(0, 1, 2)) / cnt
    var1 = jnp.maximum(jnp.sum(xr * xr, axis=(0, 1, 2)) / cnt - mean1 * mean1, 0.0)
    a1 = params["bn1_w"] * jax.lax.rsqrt(var1 + _EPS)
    b1aff = params["bn1_b"] - mean1 * a1
    shift1 = _safe_div(b1aff, a1)                  # scale a1 folded into w1 below

    w1b = _banded_conv_weights(params["w1"], a1, W)          # (3, WCi, WCo) bf16
    masks = _row_masks(H, WCi)                               # (2, H, WCi) f32
    s1_row = jnp.tile(shift1, W).reshape(1, WCi).astype(jnp.float32)
    c1_row = jnp.tile(params["b1"], W).reshape(1, WCo).astype(jnp.float32)

    # ---- pass A: t1 (bf16) + per-image bn2 partial sums --------------------
    blocks_a = [((1, H, WCi), jnp.float32), ((3, WCi, WCo), jnp.bfloat16),
                ((2, H, WCi), jnp.float32), ((1, WCi), jnp.float32),
                ((1, WCo), jnp.float32), ((1, H, WCo), jnp.bfloat16),
                ((1, 2, WCo), jnp.float32)]
    t1, psums = pl.pallas_call(
        _pass_a_kernel,
        grid=(N,),
        in_specs=[
            pl.BlockSpec((1, H, WCi), lambda n: (n, 0, 0)),
            pl.BlockSpec((3, WCi, WCo), lambda n: (0, 0, 0)),
            pl.BlockSpec((2, H, WCi), lambda n: (0, 0, 0)),
            pl.BlockSpec((1, WCi), lambda n: (0, 0)),
            pl.BlockSpec((1, WCo), lambda n: (0, 0)),
        ],
        out_specs=[
            pl.BlockSpec((1, H, WCo), lambda n: (n, 0, 0)),
            pl.BlockSpec((1, 2, WCo), lambda n: (n, 0, 0)),
        ],
        out_shape=[
            jax.ShapeDtypeStruct((N, H, WCo), jnp.bfloat16),
            jax.ShapeDtypeStruct((N, 2, WCo), jnp.float32),
        ],
        compiler_params=pltpu.CompilerParams(
            dimension_semantics=("parallel",),   # images shard across v7x's 2 TCs
            vmem_limit_bytes=_vmem_limit(blocks_a)),
    )(x, w1b, masks, s1_row, c1_row)

    # ---- bn2 scale/shift from global (N,H,W) stats (one-pass combine) ------
    tot = jnp.sum(psums.reshape(N, 2, W, Cout), axis=(0, 2))   # (2, Cout)
    mean2 = tot[0] / cnt
    var2 = jnp.maximum(tot[1] / cnt - mean2 * mean2, 0.0)
    a2 = params["bn2_w"] * jax.lax.rsqrt(var2 + _EPS)
    b2aff = params["bn2_b"] - mean2 * a2
    shift2 = _safe_div(b2aff, a2)                  # scale a2 folded into w2 below
    s2_row = jnp.tile(shift2, W).reshape(1, WCo).astype(jnp.float32)

    # ---- pass B -------------------------------------------------------------
    if stride == 1:
        w2b = _banded_conv_weights(params["w2"], a2, W)      # (3, WCo, WCo)
        c2_row = jnp.tile(params["b2"], W).reshape(1, WCo).astype(jnp.float32)
        blocks_b = [((1, H, WCi), jnp.float32), ((1, H, WCo), jnp.bfloat16),
                    ((3, WCo, WCo), jnp.bfloat16), ((2, H, WCi), jnp.float32),
                    ((1, WCo), jnp.float32), ((1, WCo), jnp.float32),
                    ((1, H, WCo), jnp.float32)]
        out = pl.pallas_call(
            _res_kernel,
            grid=(N,),
            in_specs=[
                pl.BlockSpec((1, H, WCi), lambda n: (n, 0, 0)),
                pl.BlockSpec((1, H, WCo), lambda n: (n, 0, 0)),
                pl.BlockSpec((3, WCo, WCo), lambda n: (0, 0, 0)),
                pl.BlockSpec((2, H, WCi), lambda n: (0, 0, 0)),
                pl.BlockSpec((1, WCo), lambda n: (0, 0)),
                pl.BlockSpec((1, WCo), lambda n: (0, 0)),
            ],
            out_specs=pl.BlockSpec((1, H, WCo), lambda n: (n, 0, 0)),
            out_shape=jax.ShapeDtypeStruct((N, H, WCo), jnp.float32),
            compiler_params=pltpu.CompilerParams(
                dimension_semantics=("parallel",),
                vmem_limit_bytes=_vmem_limit(blocks_b)),
        )(x, t1, w2b, masks, s2_row, c2_row)
        out = out.reshape(N, H, W, Cout)
    else:
        # bn3 affine (applied to x, no relu) from one fused pass over x.
        mean3 = jnp.sum(xs, axis=(0, 1, 2)) / cnt
        var3 = jnp.maximum(jnp.sum(xs * xs, axis=(0, 1, 2)) / cnt - mean3 * mean3, 0.0)
        a3 = params["bn3_w"] * jax.lax.rsqrt(var3 + _EPS)
        b3aff = params["bn3_b"] - mean3 * a3

        WoCo = Wo * Cout
        w2bp = _banded_conv_weights(params["w2"], a2, W, pool_w=True)  # (3, WCo, WoCo)
        wbp = _bypass_pooled_weight(params["wb"], a3, W)               # (WCi, WoCo)
        pv = _vpool_matrix(H)                                          # (Ho, H) bf16
        # Pooling of a per-channel constant is the constant: fold conv2 bias and
        # the bypass constant (b3aff through the 1x1 conv + its bias) together.
        cbyp = params["wb"][:, :, 0, 0] @ b3aff + params["bb"]
        cb_row = jnp.tile(params["b2"] + cbyp, Wo).reshape(1, WoCo).astype(jnp.float32)

        blocks_b = [((1, H, WCi), jnp.float32), ((1, H, WCo), jnp.bfloat16),
                    ((3, WCo, WoCo), jnp.bfloat16), ((2, H, WCi), jnp.float32),
                    ((1, WCo), jnp.float32), ((WCi, WoCo), jnp.bfloat16),
                    ((Ho, H), jnp.bfloat16), ((1, WoCo), jnp.float32),
                    ((1, Ho, WoCo), jnp.float32)]
        out = pl.pallas_call(
            _pool_res_kernel,
            grid=(N,),
            in_specs=[
                pl.BlockSpec((1, H, WCi), lambda n: (n, 0, 0)),
                pl.BlockSpec((1, H, WCo), lambda n: (n, 0, 0)),
                pl.BlockSpec((3, WCo, WoCo), lambda n: (0, 0, 0)),
                pl.BlockSpec((2, H, WCi), lambda n: (0, 0, 0)),
                pl.BlockSpec((1, WCo), lambda n: (0, 0)),
                pl.BlockSpec((WCi, WoCo), lambda n: (0, 0)),
                pl.BlockSpec((Ho, H), lambda n: (0, 0)),
                pl.BlockSpec((1, WoCo), lambda n: (0, 0)),
            ],
            out_specs=pl.BlockSpec((1, Ho, WoCo), lambda n: (n, 0, 0)),
            out_shape=jax.ShapeDtypeStruct((N, Ho, WoCo), jnp.float32),
            compiler_params=pltpu.CompilerParams(
                dimension_semantics=("parallel",),
                vmem_limit_bytes=_vmem_limit(blocks_b)),
        )(x, t1, w2bp, masks, s2_row, wbp, pv, cb_row)
        out = out.reshape(N, Ho, Wo, Cout)

    return jnp.transpose(out, (0, 3, 1, 2))            # NHWC -> NCHW


# ----------------------- deterministic parameter init -----------------------
def init_params(key, in_ch, out_ch, stride=1):
    ks = jax.random.split(key, 6)

    def xavier(k, shape, gain):  # shape = (Cout, Cin, kh, kw)
        fan_in = shape[1] * shape[2] * shape[3]
        fan_out = shape[0] * shape[2] * shape[3]
        bound = gain * math.sqrt(6.0 / (fan_in + fan_out))
        return jax.random.uniform(k, shape, jnp.float32, -bound, bound)

    def conv_bias(k, out_c, fan_in):  # PyTorch default Conv2d bias init
        bound = 1.0 / math.sqrt(fan_in)
        return jax.random.uniform(k, (out_c,), jnp.float32, -bound, bound)

    p = {
        "w1": xavier(ks[0], (out_ch, in_ch, 3, 3), 1.0),
        "b1": conv_bias(ks[1], out_ch, in_ch * 9),
        "w2": xavier(ks[2], (out_ch, out_ch, 3, 3), 1.0),
        "b2": conv_bias(ks[3], out_ch, out_ch * 9),
        "bn1_w": jnp.ones((in_ch,), jnp.float32),
        "bn1_b": jnp.zeros((in_ch,), jnp.float32),
        "bn2_w": jnp.ones((out_ch,), jnp.float32),
        "bn2_b": jnp.zeros((out_ch,), jnp.float32),
    }
    if stride != 1:
        p["bn3_w"] = jnp.ones((in_ch,), jnp.float32)
        p["bn3_b"] = jnp.zeros((in_ch,), jnp.float32)
        p["wb"] = xavier(ks[4], (out_ch, in_ch, 1, 1), 1.4142)
        p["bb"] = conv_bias(ks[5], out_ch, in_ch)
    return p


# -------------------------- pure-JAX reference ------------------------------
def reference(x_nchw, params, stride=1):
    x = x_nchw.astype(jnp.float32)

    def bn(t, g, b):
        mean = jnp.mean(t, axis=(0, 2, 3), keepdims=True)
        var = jnp.mean((t - mean) ** 2, axis=(0, 2, 3), keepdims=True)
        return ((t - mean) / jnp.sqrt(var + _EPS)) * g.reshape(1, -1, 1, 1) \
            + b.reshape(1, -1, 1, 1)

    def conv(t, w, b, pad):
        y = jax.lax.conv_general_dilated(
            t, w, (1, 1), [(pad, pad), (pad, pad)],
            dimension_numbers=("NCHW", "OIHW", "NCHW"),
            precision=jax.lax.Precision.HIGHEST)
        return y + b.reshape(1, -1, 1, 1)

    t = jax.nn.relu(x)
    t = bn(t, params["bn1_w"], params["bn1_b"])
    t = conv(t, params["w1"], params["b1"], 1)
    t = jax.nn.relu(t)
    t = bn(t, params["bn2_w"], params["bn2_b"])
    t = conv(t, params["w2"], params["b2"], 1)
    if stride == 1:
        return t + x

    def pool(a):
        n, c, h, w = a.shape
        return a.reshape(n, c, h // 2, 2, w // 2, 2).mean(axis=(3, 5))

    byp = bn(x, params["bn3_w"], params["bn3_b"])
    byp = conv(byp, params["wb"], params["bb"], 0)
    return pool(t) + pool(byp)


if __name__ == "__main__":
    key = jax.random.PRNGKey(0)
    kx, kp1, kp2 = jax.random.split(key, 3)
    # W*C = 128 -> lane-dense layout; N = 4 -> >= 2 grid steps per v7x TensorCore.
    N, C, H, W = 4, 8, 16, 16
    x = jax.random.normal(kx, (N, C, H, W), jnp.float32)

    # stride = 1 (identity bypass)
    p1 = init_params(kp1, C, C, stride=1)
    y1 = res_block_dis_forward(x, p1, stride=1)
    r1 = reference(x, p1, stride=1)

    # stride = 2 (bn3 -> 1x1 conv -> avg-pool bypass)
    p2 = init_params(kp2, C, C, stride=2)
    y2 = res_block_dis_forward(x, p2, stride=2)
    r2 = reference(x, p2, stride=2)

    jax.block_until_ready((y1, y2))
    assert y1.shape == (N, C, H, W)
    assert y2.shape == (N, C, H // 2, W // 2)
    # Tolerances account for bf16 MXU operands + bf16 inter-pass t1 (f32
    # accumulation everywhere): expected max-abs error ~1e-2 against the
    # f32/HIGHEST reference.
    for name, y, r in (("stride1", y1, r1), ("stride2", y2, r2)):
        max_err = float(jnp.max(jnp.abs(y - r)))
        rel_err = float(jnp.linalg.norm(y - r) / jnp.linalg.norm(r))
        assert max_err < 8e-2 and rel_err < 2e-2, (name, max_err, rel_err)
    print("KERNEL_OK")
</pallas_src>

<mosaic_0001>
module attributes {stable_mosaic.version = 11 : i64} {
  func.func @_pass_a_kernel(%arg0: i32, %arg1: memref<1x16x128xf32, #tpu.memory_space<vmem>>, %arg2: memref<3x128x128xbf16, #tpu.memory_space<vmem>>, %arg3: memref<2x16x128xf32, #tpu.memory_space<vmem>>, %arg4: memref<1x128xf32, #tpu.memory_space<vmem>>, %arg5: memref<1x128xf32, #tpu.memory_space<vmem>>, %arg6: memref<1x16x128xbf16, #tpu.memory_space<vmem>>, %arg7: memref<1x2x128xf32, #tpu.memory_space<vmem>>) attributes {dimension_semantics = [#tpu.dimension_semantics<parallel>], iteration_bounds = array<i64: 4>, scalar_prefetch = 0 : i64, scratch_operands = 0 : i64, tpu.core_type = #tpu.core_type<tc>, window_params = [{transform_indices = @transform_0, window_bounds = array<i64: 1, 16, 128>}, {pipeline_mode = #tpu.pipeline_mode<synchronous>, transform_indices = @transform_1, window_bounds = array<i64: 3, 128, 128>}, {pipeline_mode = #tpu.pipeline_mode<synchronous>, transform_indices = @transform_2, window_bounds = array<i64: 2, 16, 128>}, {pipeline_mode = #tpu.pipeline_mode<synchronous>, transform_indices = @transform_3, window_bounds = array<i64: 1, 128>}, {pipeline_mode = #tpu.pipeline_mode<synchronous>, transform_indices = @transform_4, window_bounds = array<i64: 1, 128>}, {transform_indices = @transform_5, window_bounds = array<i64: 1, 16, 128>}, {transform_indices = @transform_6, window_bounds = array<i64: 1, 2, 128>}]} {
    %c0 = arith.constant 0 : index
    %c0_0 = arith.constant 0 : index
    %c0_1 = arith.constant 0 : index
    %0 = vector.load %arg1[%c0, %c0_0, %c0_1] : memref<1x16x128xf32, #tpu.memory_space<vmem>>, vector<1x16x128xf32>
    %1 = vector.shape_cast %0 : vector<1x16x128xf32> to vector<16x128xf32>
    %cst = arith.constant 0.000000e+00 : f32
    %2 = vector.broadcast %cst : f32 to vector<16x128xf32>
    %3 = arith.maximumf %1, %2 : vector<16x128xf32>
    %c0_2 = arith.constant 0 : index
    %c0_3 = arith.constant 0 : index
    %4 = vector.load %arg4[%c0_2, %c0_3] : memref<1x128xf32, #tpu.memory_space<vmem>>, vector<1x128xf32>
    %5 = vector.broadcast %4 : vector<1x128xf32> to vector<16x128xf32>
    %6 = arith.addf %3, %5 : vector<16x128xf32>
    %7 = arith.truncf %6 : vector<16x128xf32> to vector<16x128xbf16>
    %c1 = arith.constant 1 : index
    %c0_4 = arith.constant 0 : index
    %c0_5 = arith.constant 0 : index
    %8 = vector.load %arg2[%c1, %c0_4, %c0_5] : memref<3x128x128xbf16, #tpu.memory_space<vmem>>, vector<1x128x128xbf16>
    %9 = vector.shape_cast %8 : vector<1x128x128xbf16> to vector<128x128xbf16>
    %cst_6 = arith.constant dense<0.000000e+00> : vector<16x128xf32>
    %10 = tpu.matmul %7, %9, %cst_6 {dimension_numbers = #tpu.dot_dimension_numbers<[1], [0], [0], [1], [0, 0, 1, 1], [], []>} : vector<16x128xbf16>, vector<128x128xbf16>, vector<16x128xf32> -> vector<16x128xf32>
    %c1_i32 = arith.constant 1 : i32
    %11 = tpu.dynamic_rotate %6 by %c1_i32 dim 0 : vector<16x128xf32>, i32 -> vector<16x128xf32>
    %c0_7 = arith.constant 0 : index
    %c0_8 = arith.constant 0 : index
    %c0_9 = arith.constant 0 : index
    %12 = vector.load %arg3[%c0_7, %c0_8, %c0_9] : memref<2x16x128xf32, #tpu.memory_space<vmem>>, vector<1x16x128xf32>
    %13 = vector.shape_cast %12 : vector<1x16x128xf32> to vector<16x128xf32>
    %14 = arith.mulf %11, %13 : vector<16x128xf32>
    %15 = arith.truncf %14 : vector<16x128xf32> to vector<16x128xbf16>
    %c0_10 = arith.constant 0 : index
    %c0_11 = arith.constant 0 : index
    %c0_12 = arith.constant 0 : index
    %16 = vector.load %arg2[%c0_10, %c0_11, %c0_12] : memref<3x128x128xbf16, #tpu.memory_space<vmem>>, vector<1x128x128xbf16>
    %17 = vector.shape_cast %16 : vector<1x128x128xbf16> to vector<128x128xbf16>
    %cst_13 = arith.constant dense<0.000000e+00> : vector<16x128xf32>
    %18 = tpu.matmul %15, %17, %cst_13 {dimension_numbers = #tpu.dot_dimension_numbers<[1], [0], [0], [1], [0, 0, 1, 1], [], []>} : vector<16x128xbf16>, vector<128x128xbf16>, vector<16x128xf32> -> vector<16x128xf32>
    %19 = arith.addf %10, %18 : vector<16x128xf32>
    %c15_i32 = arith.constant 15 : i32
    %20 = tpu.dynamic_rotate %6 by %c15_i32 dim 0 : vector<16x128xf32>, i32 -> vector<16x128xf32>
    %c1_14 = arith.constant 1 : index
    %c0_15 = arith.constant 0 : index
    %c0_16 = arith.constant 0 : index
    %21 = vector.load %arg3[%c1_14, %c0_15, %c0_16] : memref<2x16x128xf32, #tpu.memory_space<vmem>>, vector<1x16x128xf32>
    %22 = vector.shape_cast %21 : vector<1x16x128xf32> to vector<16x128xf32>
    %23 = arith.mulf %20, %22 : vector<16x128xf32>
    %24 = arith.truncf %23 : vector<16x128xf32> to vector<16x128xbf16>
    %c2 = arith.constant 2 : index
    %c0_17 = arith.constant 0 : index
    %c0_18 = arith.constant 0 : index
    %25 = vector.load %arg2[%c2, %c0_17, %c0_18] : memref<3x128x128xbf16, #tpu.memory_space<vmem>>, vector<1x128x128xbf16>
    %26 = vector.shape_cast %25 : vector<1x128x128xbf16> to vector<128x128xbf16>
    %cst_19 = arith.constant dense<0.000000e+00> : vector<16x128xf32>
    %27 = tpu.matmul %24, %26, %cst_19 {dimension_numbers = #tpu.dot_dimension_numbers<[1], [0], [0], [1], [0, 0, 1, 1], [], []>} : vector<16x128xbf16>, vector<128x128xbf16>, vector<16x128xf32> -> vector<16x128xf32>
    %28 = arith.addf %19, %27 : vector<16x128xf32>
    %c0_20 = arith.constant 0 : index
    %c0_21 = arith.constant 0 : index
    %29 = vector.load %arg5[%c0_20, %c0_21] : memref<1x128xf32, #tpu.memory_space<vmem>>, vector<1x128xf32>
    %30 = vector.broadcast %29 : vector<1x128xf32> to vector<16x128xf32>
    %31 = arith.addf %28, %30 : vector<16x128xf32>
    %32 = arith.truncf %31 : vector<16x128xf32> to vector<16x128xbf16>
    %c0_22 = arith.constant 0 : index
    %c0_23 = arith.constant 0 : index
    %c0_24 = arith.constant 0 : index
    %33 = vector.load %arg6[%c0_22, %c0_23, %c0_24] : memref<1x16x128xbf16, #tpu.memory_space<vmem>>, vector<1x16x128xbf16>
    %34 = vector.shape_cast %33 : vector<1x16x128xbf16> to vector<16x128xbf16>
    %35 = vector.shape_cast %32 : vector<16x128xbf16> to vector<1x16x128xbf16>
    tpu.vector_store %arg6[%c0_22, %c0_23, %c0_24], %35 {strides = array<i32>} : memref<1x16x128xbf16, #tpu.memory_space<vmem>>, vector<1x16x128xbf16>,
    %cst_25 = arith.constant 0.000000e+00 : f32
    %36 = vector.broadcast %cst_25 : f32 to vector<16x128xf32>
    %37 = arith.maximumf %31, %36 : vector<16x128xf32>
    %cst_26 = arith.constant dense<0.000000e+00> : vector<128xf32>
    %38 = vector.multi_reduction <add>, %37, %cst_26 [0] : vector<16x128xf32> to vector<128xf32>
    %39 = vector.shape_cast %38 : vector<128xf32> to vector<1x128xf32>
    %40 = arith.mulf %37, %37 : vector<16x128xf32>
    %cst_27 = arith.constant dense<0.000000e+00> : vector<128xf32>
    %41 = vector.multi_reduction <add>, %40, %cst_27 [0] : vector<16x128xf32> to vector<128xf32>
    %42 = vector.shape_cast %41 : vector<128xf32> to vector<1x128xf32>
    %43 = tpu.concatenate %39, %42 in 0 : vector<1x128xf32>, vector<1x128xf32> -> vector<2x128xf32>
    %c0_28 = arith.constant 0 : index
    %c0_29 = arith.constant 0 : index
    %c0_30 = arith.constant 0 : index
    %44 = vector.load %arg7[%c0_28, %c0_29, %c0_30] : memref<1x2x128xf32, #tpu.memory_space<vmem>>, vector<1x2x128xf32>
    %45 = vector.shape_cast %44 : vector<1x2x128xf32> to vector<2x128xf32>
    %46 = vector.shape_cast %43 : vector<2x128xf32> to vector<1x2x128xf32>
    tpu.vector_store %arg7[%c0_28, %c0_29, %c0_30], %46 {strides = array<i32>} : memref<1x2x128xf32, #tpu.memory_space<vmem>>, vector<1x2x128xf32>,
    return
  }
  func.func @transform_0(%arg0: i32) -> (i32, i32, i32) {
    %c0_i32 = arith.constant 0 : i32
    %c0_i32_0 = arith.constant 0 : i32
    %c0_i32_1 = arith.constant 0 : i32
    return %arg0, %c0_i32, %c0_i32_0 : i32, i32, i32
  }
  func.func @transform_1(%arg0: i32) -> (i32, i32, i32) {
    %c0_i32 = arith.constant 0 : i32
    %c0_i32_0 = arith.constant 0 : i32
    %c0_i32_1 = arith.constant 0 : i32
    %c0_i32_2 = arith.constant 0 : i32
    return %c0_i32, %c0_i32_0, %c0_i32_1 : i32, i32, i32
  }
  func.func @transform_2(%arg0: i32) -> (i32, i32, i32) {
    %c0_i32 = arith.constant 0 : i32
    %c0_i32_0 = arith.constant 0 : i32
    %c0_i32_1 = arith.constant 0 : i32
    %c0_i32_2 = arith.constant 0 : i32
    return %c0_i32, %c0_i32_0, %c0_i32_1 : i32, i32, i32
  }
  func.func @transform_3(%arg0: i32) -> (i32, i32) {
    %c0_i32 = arith.constant 0 : i32
    %c0_i32_0 = arith.constant 0 : i32
    %c0_i32_1 = arith.constant 0 : i32
    return %c0_i32, %c0_i32_0 : i32, i32
  }
  func.func @transform_4(%arg0: i32) -> (i32, i32) {
    %c0_i32 = arith.constant 0 : i32
    %c0_i32_0 = arith.constant 0 : i32
    %c0_i32_1 = arith.constant 0 : i32
    return %c0_i32, %c0_i32_0 : i32, i32
  }
  func.func @transform_5(%arg0: i32) -> (i32, i32, i32) {
    %c0_i32 = arith.constant 0 : i32
    %c0_i32_0 = arith.constant 0 : i32
    %c0_i32_1 = arith.constant 0 : i32
    return %arg0, %c0_i32, %c0_i32_0 : i32, i32, i32
  }
  func.func @transform_6(%arg0: i32) -> (i32, i32, i32) {
    %c0_i32 = arith.constant 0 : i32
    %c0_i32_0 = arith.constant 0 : i32
    %c0_i32_1 = arith.constant 0 : i32
    return %arg0, %c0_i32, %c0_i32_0 : i32, i32, i32
  }
}

</mosaic_0001>

<bundles_post_ra>
// kernel: tpu_custom_call.1
= control target key start
LH: loop header
LB: loop body
LE: loop exit
PB: predicated region body
PF: predicated region fallthrough
CT: control target
= control target key end

     0   :  { %12 = vsyncpa [#allocation3], 0  ;;  %s1412_s0 = inlined_call_operand.hbm [shape: f32[4,16,128], index: 0, kind: input, shape index: {}]   ;;  %s1413_s1 = inlined_call_operand.hbm [shape: bf16[3,128,128], index: 1, kind: input, shape index: {}]   ;;  %s1414_s2 = inlined_call_operand.hbm [shape: f32[2,16,128], index: 2, kind: input, shape index: {}]   ;;  %s1415_s3 = inlined_call_operand.vmem [shape: f32[1,128], index: 3, kind: input, shape index: {}]   ;;  %s1416_s4 = inlined_call_operand.vmem [shape: f32[1,128], index: 4, kind: input, shape index: {}]   ;;  %s1417_s5 = inlined_call_operand.hbm [shape: bf16[4,16,128], index: 5, kind: output, shape index: {0}]   ;;  %s1418_s6 = inlined_call_operand.hbm [shape: f32[4,2,128], index: 6, kind: output, shape index: {1}]  }
   0x1   :  { %14 = vsyncpa [#allocation3 + $0x1], 0 }
   0x2   :  { %15 = vsyncpa [#allocation6], 0 }
   0x3   :  { %16 = vsyncpa [#allocation4], 0 }
   0x4   :  { %18 = vsyncpa [#allocation4 + $0x1], 0 }
   0x5   :  { %19 = vsyncpa [#allocation10], 0 }
   0x6   :  { %21 = vsyncpa [#allocation10 + $0x1], 0  ;;  %s1244_s21 = smov 0   ;;  %s1246_s22 = smov 0  }
   0x7   :  { %s1248_s23 = smov 0   ;;  %s1250_s24 = smov 0  }
   0x8 LB: > { %s1265_s25 = sadd.s32 4294967295, %s1199_s24   ;;  %s779_s26 = sadd.s32 4294967294, %s1199_s24   ;;  %s1199_s24 = sphi %s1250_s24, %s1431_s24   ;;  %s1195_s23 = sphi %s1248_s23, %s1430_s23   ;;  %s1191_s22 = sphi %s1246_s22, %s1429_s22   ;;  %s1187_s21 = sphi %s1244_s21, %s1428_s21  }
   0x9   : > { %p47_p0 = scmp.ne.s32.totalorder %s1191_s22, %s1187_s21  ;;  %p48_p1 = scmp.eq.s32.totalorder %s1265_s25, 0 }
   0xa   : > { %p155_p2 = scmp.eq.s32.totalorder %s1265_s25, 3  ;;  %p161_p3 = scmp.eq.s32.totalorder %s779_s26, 3 }
   0xb   : > { %p1274_p4 = por %p48_p1, %p47_p0  ;;  %p780_p5 = scmp.ge.s32.totalorder %s1199_s24, 1 }
   0xc   : > { %p1279_p6 = por %p161_p3, %p47_p0  ;;  %p194_p7 = scmp.lt.s32.totalorder %s1199_s24, 5 }
   0xd   : > { %s205_s7 = sshll.u32 %s1413_s1, 4  ;;  %s1201_s9 = smov [#allocation5]   ;;  %s206_s7 = int_to_ptr.hbm [resolvable:$true] %s205_s7 }
   0xe   : > { %p1287_p8 = pnand %p780_p5, %p194_p7  ;;  %s207_s10 = sshll.u32 %s1201_s9, 4  ;;  %s208_s10 = int_to_ptr.vmem [resolvable:$true] %s207_s10 }
   0xf   : > { %s219_s13 = sshll.u32 %s1414_s2, 4  ;;  %s1202_s14 = smov 64   ;;  %s220_s13 = int_to_ptr.hbm [resolvable:$true] %s219_s13 }
  0x10   : > { %p941_p9 = pneg %p1287_p8  ;;  %s1203_s15 = smov 4  }
  0x11   : > { %s1204_s16 = smov [#allocation7]   ;;  %s1419_s18 = smov 128  }
  0x12   : > { %p942_p10 = pnand %p941_p9, %p48_p1  ;;  %s221_s17 = sshll.u32 %s1204_s16, 4  ;;  %s222_s17 = int_to_ptr.vmem [resolvable:$true] %s221_s17 }
  0x13   : > { %s1420_s19 = smov 8   ;;  %s1302_s20 = sadd.s32 1, %s1199_s24  }
  0x14   : > { %944 = dma.hbm_to_vmem [thread:$0]  (!%p942_p10), %s206_s7, 3072, %s208_s10, [#allocation6], %s1202_s14, %s1202_s14, %s1203_s15  }
  0x15   : > { %947 = dma.hbm_to_vmem [thread:$0]  (!%p942_p10), %s220_s13, 512, %s222_s17, [#allocation6], %s1419_s18, %s1419_s18, %s1420_s19  }
  0x16   : > { %s31_s26 = ssub.s32 %s1199_s24, %s1302_s20  ;;  %s34_s29 = sadd.s32 1, %s1195_s23 }
  0x17   : > { %p32_p11 = scmp.eq.s32.totalorder %s31_s26, 0  ;;  %p41_p12 = scmp.ne.s32.totalorder %s1195_s23, %s1191_s22 }
  0x18   : > { %p42_p13 = scmp.eq.s32.totalorder %s1199_s24, 0  ;;  %p961_p5 = scmp.lt.s32.totalorder %s1199_s24, 4 }
  0x19   : > { %s1311_s30 = scalar_select %p32_p11, %s1195_s23, %s34_s29  }
  0x1a   : > { %p43_p0 = por %p42_p13, %p41_p12  ;;  %p1315_p3 = por %p155_p2, %p41_p12 }
  0x1b   : > { %s241_s9 = sand.u32 1, %s1195_s23   ;;  %s896_s11 = sshll.u32 %s1199_s24, 4 }
  0x1c   : > { %s784_s10 = sshll.u32 %s241_s9, 4  ;;  %s250_s14 = scalar_lea.hbm %s1412_s0, %s896_s11 }
  0x1d   : > { %s245_s15 = scalar_lea.vmem [#allocation2], %s784_s10  ;;  %s251_s17 = sshll.u32 %s250_s14, 4  ;;  %s252_s17 = int_to_ptr.hbm [resolvable:$true] %s251_s17 }
  0x1e   : > { %s253_s16 = sshll.u32 %s245_s15, 4  ;;  %p1325_p7 = pnand %p961_p5, %p43_p0  ;;  %s254_s16 = int_to_ptr.vmem [resolvable:$true] %s253_s16 }
  0x1f   : > { %s242_s29 = scalar_lea.sflag [#allocation3], %s241_s9  ;;  %s1067_s18 = sshra.s32 %s252_s17, 4  ;;  %s1068_s18 = int_to_ptr.hbm [resolvable:$true] %s1067_s18 }
  0x20   : > { %s1069_s19 = scalar_lea.hbm %s1068_s18, 16  ;;  %p1071_p9 = pneg %p1325_p7 }
  0x21   : > { %p1070_p2 = scmp.ne.s32.totalorder %s1068_s18, %s1069_s19  ;;  %s1074_s12 = scalar_lea.hbm %s1412_s0, 64 }
  0x22   : > { %p1075_p12 = scmp.lt.s32.totalorder %s1068_s18, %s1412_s0  ;;  %p1076_p13 = scmp.lt.s32.totalorder %s1074_s12, %s1069_s19 }
  0x23   : > { %p1072_p10 = pnand %p1071_p9, %p1070_p2 }
  0x24   : > { %p1077_p0 = por %p1076_p13, %p1075_p12 }
  0x25   : > { %p1073_p11 = pneg %p1072_p10 }
  0x27   : > { %p1078_p5 = pnand %p1077_p0, %p1073_p11 }
  0x29   : > { %1081 = shalt.err (!%p1078_p5)
}
  0x2a   : > { %s1426_s9 = smov 8   ;;  %s1427_s15 = smov 128  }
  0x2b   : > { %951 = dma.hbm_to_vmem [thread:$0]  (!%p1325_p7), %s252_s17, 256, %s254_s16, %s242_s29, %s1427_s15, %s1427_s15, %s1426_s9  }
  0x2c   : > { %265 = sbr.rel (%p1287_p8) target bundleno = 252 (0xfc), region = 40  ;;  %s1345_s11 = sand.u32 (!%p1287_p8), 1, %s1191_s22  }
  0x2d   : > { %s788_s18 = sshll.u32 (!%p1287_p8), %s1345_s11, 4  ;;  %s268_s19 = scalar_lea.sflag (!%p1287_p8), [#allocation3], %s1345_s11 }
  0x2e   : > { %s271_s10 = scalar_lea.vmem (!%p1287_p8), [#allocation2], %s788_s18 }
  0x31   : > { %1170 = dma.done.wait (%p1274_p4), %s268_s19, 256  }
  0x32   : > { %1172 = vsyncadd (%p1274_p4), %s268_s19, 4294967040 }
  0x33   : > { %1174 = dma.done.wait (%p48_p1), [#allocation6], 3584  }
  0x34   : > { %1176 = vsyncadd (%p48_p1), [#allocation6], 4294963712  ;;  %v912_v0 = vld [vmem:[#allocation5 + $0x38] sm:$0xff]  ;;  %v911_v3 = vld [vmem:[#allocation5 + $0x30] sm:$0xff]  ;;  %v346_v17 = vlaneseq  ;;  %s921_s26 = sshll.u32 %s1265_s25, 3  ;;  %s791_s29 = sshll.u32 %s1345_s11, 3 }
  0x35   : > { %v904_v1 = vld [vmem:[#allocation5 + $0x78] sm:$0xff]  ;;  %420 = vmatpush.bf16.msra.mxu0 %v912_v0  ;;  %v903_v4 = vld [vmem:[#allocation5 + $0x70] sm:$0xff]  ;;  %v910_v6 = vld [vmem:[#allocation5 + $0x28] sm:$0xff]  ;;  %s636_s14 = scalar_lea.hbm %s1417_s5, %s921_s26  ;;  %s308_s9 = scalar_lea.vmem [#allocation8], %s791_s29 }
  0x36   : > { %v920_v2 = vld [vmem:[#allocation5 + $0xb8] sm:$0xff]  ;;  %482 = vmatpush.bf16.msra.mxu1 %v904_v1  ;;  %v919_v5 = vld [vmem:[#allocation5 + $0xb0] sm:$0xff]  ;;  %v902_v7 = vld [vmem:[#allocation5 + $0x68] sm:$0xff]  ;;  %v347_v23 = vshrl.u32 %v346_v17, 7  ;;  %s637_s15 = sshll.u32 %s308_s9, 4  ;;  %s639_s18 = sshll.u32 %s636_s14, 4  ;;  %s638_s15 = int_to_ptr.vmem [resolvable:$true] %s637_s15  ;;  %s640_s18 = int_to_ptr.hbm [resolvable:$true] %s639_s18 }
  0x37   : > { %572 = vmatpush.bf16.msra.mxu2 %v920_v2  ;;  %v918_v8 = vld [vmem:[#allocation5 + $0xa8] sm:$0xff]  ;;  %v316_v9 = vld [vmem:[%s271_s10] sm:$0xff]  ;;  %v908_v18 = vld [vmem:[#allocation5 + $0x18] sm:$0xff]  ;;  %s620_s19 = scalar_lea.sflag [#allocation4], %s1345_s11  ;;  %s1117_s17 = scalar_lea.hbm %s1417_s5, 32 }
  0x38   : > { %v317_v10 = vld [vmem:[%s271_s10 + $0x8] sm:$0xff]  ;;  %v909_v11 = vld [vmem:[#allocation5 + $0x20] sm:$0xff]  ;;  %v318_v13 = vmax.f32 %v316_v9, 0.0  ;;  %v907_v24 = vld [vmem:[#allocation5 + $0x10] sm:$0xff]  ;;  %vm348_vm0 = vcmp.lt.s32.totalorder %v347_v23, 1  ;;  %vm498_vm1 = vcmp.lt.s32.totalorder %v347_v23, 7 }
  0x39   : > { %421 = vmatpush.bf16.msra.mxu0 %v911_v3  ;;  %v901_v12 = vld [vmem:[#allocation5 + $0x60] sm:$0xff]  ;;  %v319_v14 = vmax.f32 %v317_v10, 0.0  ;;  %v900_v19 = vld [vmem:[#allocation5 + $0x58] sm:$0xff]  ;;  %v899_v25 = vld [vmem:[#allocation5 + $0x50] sm:$0xff]  ;;  %s1111_s10 = sshra.s32 %s640_s18, 4  ;;  %s1112_s10 = int_to_ptr.hbm [resolvable:$true] %s1111_s10 }
  0x3a   : > { %483 = vmatpush.bf16.msra.mxu1 %v903_v4  ;;  %v1005_v15 = vld [vmem:[%s1415_s3] ss:$0 sm:$0xff]  ;;  %v916_v22 = vld [vmem:[#allocation5 + $0x98] sm:$0xff]  ;;  %v915_v28 = vld [vmem:[#allocation5 + $0x90] sm:$0xff]  ;;  %s1113_s27 = scalar_lea.hbm %s1112_s10, 8  ;;  %p1118_p7 = scmp.lt.s32.totalorder %s1112_s10, %s1417_s5 }
  0x3b   : > { %573 = vmatpush.bf16.msra.mxu2 %v919_v5  ;;  %v917_v16 = vld [vmem:[#allocation5 + $0xa0] sm:$0xff]  ;;  %v324_v20 = vadd.f32 %v1005_v15, %v318_v13  ;;  %v325_v21 = vadd.f32 %v1005_v15, %v319_v14  ;;  %v906_v31 = vld [vmem:[#allocation5 + $0x8] sm:$0xff]  ;;  %v502_v40 = vld [vmem:[#allocation7 + $0x10] sm:$0xff]  ;;  %p1114_p1 = scmp.ne.s32.totalorder %s1112_s10, %s1113_s27  ;;  %p1119_p2 = scmp.lt.s32.totalorder %s1117_s17, %s1113_s27 }
  0x3c   : > { %v898_v32 = vld [vmem:[#allocation5 + $0x48] sm:$0xff]  ;;  %v351_v35 = vld [vmem:[#allocation7] sm:$0xff]  ;;  %v503_v41 = vld [vmem:[#allocation7 + $0x18] sm:$0xff] }
  0x3d   : > { %422 = vmatpush.bf16.msra.mxu0 %v910_v6  ;;  %v344_v26 = vrot.slane %v324_v20, 7  ;;  %v345_v27 = vrot.slane %v325_v21, 7  ;;  %v496_v29 = vrot.slane %v324_v20, 1  ;;  %v497_v30 = vrot.slane %v325_v21, 1  ;;  %v352_v36 = vld [vmem:[#allocation7 + $0x8] sm:$0xff]  ;;  %v905_v44 = vld [vmem:[#allocation5] sm:$0xff]  ;;  %p1115_p4 = pnand %p1114_p1, %p1315_p3  ;;  %p1120_p9 = por %p1119_p2, %p1118_p7 }
  0x3e   : > { %484 = vmatpush.bf16.msra.mxu1 %v902_v7  ;;  %v914_v37 = vld [vmem:[#allocation5 + $0x88] sm:$0xff]  ;;  %v897_v45 = vld [vmem:[#allocation5 + $0x40] sm:$0xff]  ;;  %v326_v50 = vpack.c.bf16 %v325_v21, %v324_v20 }
  0x3f   : > { %574 = vmatpush.bf16.msra.mxu2 %v918_v8  ;;  %v349_v33 = vsel %vm348_vm0, %v344_v26, %v345_v27  ;;  %v350_v34 = vsel %vm348_vm0, %v345_v27, %v344_v26  ;;  %v499_v38 = vsel %vm498_vm1, %v496_v29, %v497_v30  ;;  %v500_v39 = vsel %vm498_vm1, %v497_v30, %v496_v29  ;;  %v913_v48 = vld [vmem:[#allocation5 + $0x80] sm:$0xff]  ;;  %p1116_p8 = pneg %p1115_p4 }
  0x40   : > { %v353_v42 = vmul.f32 %v351_v35, %v350_v34  ;;  %v354_v43 = vmul.f32 %v352_v36, %v349_v33  ;;  %v504_v46 = vmul.f32 %v502_v40, %v499_v38  ;;  %v505_v47 = vmul.f32 %v503_v41, %v500_v39  ;;  %v1006_v57 = vld [vmem:[%s1416_s4] ss:$0 sm:$0xff] }
  0x41   : > { %423 = vmatpush.bf16.msra.mxu0 %v909_v11  ;;  %p1121_p10 = pnand %p1120_p9, %p1116_p8 }
  0x42   : > { %485 = vmatpush.bf16.msra.mxu1 %v901_v12  ;;  %v355_v49 = vpack.c.bf16 %v354_v43, %v353_v42  ;;  %v506_v51 = vpack.c.bf16 %v505_v47, %v504_v46 }
  0x43   : > { %575 = vmatpush.bf16.msra.mxu2 %v917_v16 }
  0x45   : > { %424 = vmatpush.bf16.msra.mxu0 %v908_v18 }
  0x46   : > { %486 = vmatpush.bf16.msra.mxu1 %v900_v19 }
  0x47   : > { %576 = vmatpush.bf16.msra.mxu2 %v916_v22 }
  0x49   : > { %425 = vmatpush.bf16.msra.mxu0 %v907_v24 }
  0x4a   : > { %487 = vmatpush.bf16.msra.mxu1 %v899_v25 }
  0x4b   : > { %577 = vmatpush.bf16.msra.mxu2 %v915_v28 }
  0x4d   : > { %426 = vmatpush.bf16.msra.mxu0 %v906_v31 }
  0x4e   : > { %488 = vmatpush.bf16.msra.mxu1 %v898_v32 }
  0x4f   : > { %578 = vmatpush.bf16.msra.mxu2 %v914_v37 }
  0x51   : > { %427 = vmatpush.bf16.msra.mxu0 %v905_v44 }
  0x52   : > { %489 = vmatpush.bf16.msra.mxu1 %v897_v45 }
  0x53   : > { %579 = vmatpush.bf16.msra.mxu2 %v913_v48 }
  0x54   : > { %428 = vmatmul.bf16.vlgmr.msra.gmra.mxu0 %v355_v49 }
  0x55   : > { %490 = vmatmul.bf16.vlgmr.msra.gmra.mxu1 %v326_v50 }
  0x56   : > { %580 = vmatmul.bf16.vlgmr.msra.gmra.mxu2 %v506_v51 }
  0xd1   : > { %v429_v52 = vpop.f32.mrf.mxu0 }
  0xd2   : > { %v491_v53 = vpop.f32.mrf.mxu1 }
  0xd3   : > { %v492_v54 = vadd.f32 %v491_v53, %v429_v52 }
  0xd9   : > { %v581_v55 = vpop.f32.mrf.mxu2  ;;  %v431_v58 = vpop.f32.mrf.mxu0 }
  0xda   : > { %v586_v56 = vadd.f32 %v581_v55, %v492_v54  ;;  %v493_v59 = vpop.f32.mrf.mxu1 }
  0xdb   : > { %v494_v61 = vadd.f32 %v493_v59, %v431_v58 }
  0xdc   : > { %v592_v60 = vadd.f32 %v1006_v57, %v586_v56 }
  0xde   : > { %v598_v0 = vmax.f32 %v592_v60, 0.0 }
  0xe0   : > { %v607_v4 = vmul.f32 %v598_v0, %v598_v0 }
  0xe1   : > { %v583_v62 = vpop.f32.mrf.mxu2 }
  0xe2   : > { %v587_v63 = vadd.f32 %v583_v62, %v494_v61 }
  0xe4   : > { %v593_v1 = vadd.f32 %v1006_v57, %v587_v63 }
  0xe6   : > { %v925_v2 = vpack.c.bf16 %v593_v1, %v592_v60  ;;  %v599_v3 = vmax.f32 %v593_v1, 0.0 }
  0xe8   : > { %926 = vst [vmem:[%s308_s9] sm:$0xff] %v925_v2   ;;  %v600_v5 = vadd.f32 %v599_v3, %v598_v0  ;;  %v608_v6 = vmul.f32 %v599_v3, %v599_v3 }
  0xe9   : > { %1124 = shalt.err (!%p1121_p10)
}
  0xea   : > { %s1207_s12 = smov 64   ;;  %s1208_s13 = smov 4   ;;  %v601_v7 = vrot.slane %v600_v5, 4  ;;  %v609_v8 = vadd.f32 %v608_v6, %v607_v4  ;;  %vm616_vm2 = vcmask 1040384  }
  0xeb   : > { %937 = dma.vmem_to_hbm [thread:$0]  (%p1315_p3), %s638_s15, 128, %s640_s18, %s620_s19, %s1207_s12, %s1207_s12, %s1208_s13  }
  0xec   : > { %v602_v9 = vadd.f32 %v601_v7, %v600_v5  ;;  %v610_v10 = vrot.slane %v609_v8, 4  ;;  %s792_s14 = sshll.u32 %s1345_s11, 1  ;;  %s893_s9 = sshll.u32 %s1265_s25, 1 }
  0xed   : > { %s652_s8 = scalar_lea.hbm %s1418_s6, %s893_s9  ;;  %s315_s15 = scalar_lea.vmem [#allocation9], %s792_s14 }
  0xee   : > { %v603_v11 = vrot.slane %v602_v9, 2  ;;  %v611_v12 = vadd.f32 %v610_v10, %v609_v8  ;;  %s654_s18 = sshll.u32 %s315_s15, 4  ;;  %s656_s19 = sshll.u32 %s652_s8, 4  ;;  %s655_s18 = int_to_ptr.vmem [resolvable:$true] %s654_s18  ;;  %s657_s19 = int_to_ptr.hbm [resolvable:$true] %s656_s19 }
  0xef   : > { %s625_s25 = scalar_lea.sflag [#allocation10], %s1345_s11  ;;  %s1139_s16 = sshra.s32 %s657_s19, 4  ;;  %s1140_s16 = int_to_ptr.hbm [resolvable:$true] %s1139_s16 }
  0xf0   : > { %v604_v13 = vadd.f32 %v603_v11, %v602_v9  ;;  %v612_v14 = vrot.slane %v611_v12, 2  ;;  %s1141_s17 = scalar_lea.hbm %s1140_s16, 2  ;;  %s1145_s12 = scalar_lea.hbm %s1418_s6, 8 }
  0xf1   : > { %p1142_p11 = scmp.ne.s32.totalorder %s1140_s16, %s1141_s17  ;;  %p1146_p0 = scmp.lt.s32.totalorder %s1140_s16, %s1418_s6 }
  0xf2   : > { %v605_v15 = vrot.slane %v604_v13, 1  ;;  %v613_v16 = vadd.f32 %v612_v14, %v611_v12  ;;  %p1147_p5 = scmp.lt.s32.totalorder %s1145_s12, %s1141_s17 }
  0xf3   : > { %p1143_p12 = pnand %p1142_p11, %p1315_p3 }
  0xf4   : > { %v614_v17 = vrot.slane %v613_v16, 1  ;;  %v606_v18 = vadd.f32 %v605_v15, %v604_v13  ;;  %p1148_p1 = por %p1147_p5, %p1146_p0 }
  0xf5   : > { %p1144_p13 = pneg %p1143_p12 }
  0xf6   : > { %v615_v19 = vadd.f32 %v614_v17, %v613_v16 }
  0xf7   : > { %p1149_p4 = pnand %p1148_p1, %p1144_p13 }
  0xf8   : > { %v617_v20 = vsel %vm616_vm2, %v606_v18, %v615_v19 }
  0xf9   : > { %618 = vst [vmem:[%s315_s15] sm:$0x3] %v617_v20 }
  0xfa   : > { %1152 = shalt.err (!%p1149_p4)
}
  0xfb   : > { %938 = dma.vmem_to_hbm [thread:$0]  (%p1315_p3), %s655_s18, 32, %s657_s19, %s625_s25  }
  0xfc PF: > { %p964_p8 = scmp.ge.s32.totalorder %s1199_s24, 2  ;;  %s668_s11 = sand.u32 1, %s1187_s21  }
  0xfd   : > { %s669_s9 = scalar_lea.sflag [#allocation4], %s668_s11 }
  0xfe   : > { %p953_p7 = pnand %p964_p8, %p1279_p6 }
 0x100   : > { %p954_p2 = pneg %p953_p7 }
 0x102   : > { %1178 = dma.done.wait (%p954_p2), %s669_s9, 128  }
 0x103   : > { %1180 = vsyncadd (%p954_p2), %s669_s9, 4294967168  ;;  %s679_s10 = scalar_lea.sflag [#allocation10], %s668_s11 }
 0x104   : > { %1182 = dma.done.wait (%p954_p2), %s679_s10, 32  }
 0x105   : > { %1184 = vsyncadd (%p954_p2), %s679_s10, 4294967264  ;;  %p24_p3 = scmp.ge.s32.totalorder %s1302_s20, 6   ;;  %s1428_s21 = smov %s1191_s22 }
 0x106   : > { %s1429_s22 = smov %s1195_s23  ;;  %s1430_s23 = smov %s1311_s30 }
 0x107   : > { %s1431_s24 = smov %s1302_s20  ;;  %26 = sbr.rel (!%p24_p3) target bundleno = 8 (0x8), region = 113 }
 0x10c   :  { %685 = vsyncpa [#allocation3], 1 }
 0x10d   :  { %687 = vsyncpa [#allocation3 + $0x1], 1 }
 0x10e   :  { %688 = vsyncpa [#allocation6], 1 }
 0x10f   :  { %689 = vsyncpa [#allocation4], 1 }
 0x110   :  { %691 = vsyncpa [#allocation4 + $0x1], 1 }
 0x111   :  { %692 = vsyncpa [#allocation10], 1 }
 0x112   :  { %694 = vsyncpa [#allocation10 + $0x1], 1 }

</bundles_post_ra>
